<compile_context>
chip_gen: v5e
topology: v5e:2x2
jax: 0.10.0
libtpu: 0.0.40
codegen_flags: <defaults>
</compile_context>

<pallas_src>
import jax
import jax.numpy as jnp
from jax.experimental import pallas as pl
from jax.experimental.pallas import tpu as pltpu

_LANES = 128
_SUBLANES = 8
_GRANULE = _LANES * _SUBLANES      # 1024 samples = one dense (8, 128) f32 output vreg
_MAX_BLOCK_ROWS = 2048             # 256K samples / block -> ~6.3 MiB double-buffered VMEM


def _round_up(n: int, m: int) -> int:
    return ((n + m - 1) // m) * m


def _binary_classifier_kernel(b_ref, w_ref, x_ref, o_ref):
    """One batch tile of sigmoid(x @ W^T + b).

    b_ref: SMEM (1,) f32        -- bias (scalar path, off the vector stream)
    w_ref: VMEM (256, 128) f32  -- Linear(1, 2) weight embedded as a block-diagonal
           de-interleave matrix: w_big[2j + f, j] = W[0, f].  Same block every grid
           step -> DMA'd once and resident.
    x_ref: VMEM (TBr, 256) f32  -- 128 samples per row, features interleaved
           ([x0, x1, x0, x1, ...]) == the native row-major (B, 2) layout.
    o_ref: VMEM (TBr, 128) f32  -- dense output tile; sample s lives at
           (row s // 128, lane s % 128) == the native row-major (B, 1) layout.
    """
    b = b_ref[0]

    # Feature de-interleave + K=2 reduction folded into one small matmul on the
    # otherwise-idle MXU (full f32 precision); keeps VALU/EUP slots free and the
    # kernel cleanly HBM-bound.
    z = jnp.dot(
        x_ref[...], w_ref[...],
        preferred_element_type=jnp.float32,
        precision=jax.lax.Precision.HIGHEST,
    ) + b

    # sigmoid(z) = 0.5 * tanh(0.5 * z) + 0.5  -- single EUP transcendental,
    # exact and numerically stable.
    o_ref[...] = (0.5 * jnp.tanh(0.5 * z) + 0.5).astype(o_ref.dtype)


def binary_classifier_forward(x, weight, bias, *, max_block_rows=_MAX_BLOCK_ROWS):
    """x: (B, 2), weight: (1, 2), bias: (1,)  ->  (B, 1) f32 sigmoid(x @ W^T + b)."""
    B, in_f = x.shape
    out_f = weight.shape[0]
    assert in_f == 2 and out_f == 1

    x = x.astype(jnp.float32)

    # Pad only to the vreg granule (1024 samples), never to a block multiple:
    # waste is bounded, and when B is already aligned this path is a no-op.
    Bp = _round_up(max(B, 1), _GRANULE)
    if Bp != B:
        x = jnp.pad(x, ((0, Bp - B), (0, 0)))

    # Free relayout of the row-major (Bp, 2) buffer (no transpose / extra HBM pass):
    # row g holds samples 128*g .. 128*g + 127, features interleaved on lanes.
    rows = Bp // _LANES                      # multiple of 8
    x2 = x.reshape(rows, 2 * _LANES)

    # Embed the (1, 2) weight as a (256, 128) de-interleave matrix:
    #   w_big[2j + f, j] = weight[0, f]  =>  (x2 @ w_big)[g, j] = linear(x[128g + j]).
    # 128 KiB, built once per call (precompute/hoist for repeated inference).
    w = weight.reshape(2).astype(jnp.float32)
    w_big = (jnp.eye(_LANES, dtype=jnp.float32)[:, None, :]
             * w[None, :, None]).reshape(2 * _LANES, _LANES)
    b_flat = bias.reshape(1).astype(jnp.float32)

    # Batch tile: multiple of 8 rows that divides `rows`, capped so the exact
    # double-buffered footprint (2 * TBr * 1536 B) stays well under every
    # generation's scoped VMEM default, and >= 2 grid steps whenever possible so
    # v7x can split the batch across its 2 TensorCores.
    desired = rows if rows < 2 * _SUBLANES else min(max_block_rows, rows // 2)
    desired = max(_SUBLANES, (desired // _SUBLANES) * _SUBLANES)
    block_rows = _SUBLANES
    for cand in range(desired, _SUBLANES - 1, -_SUBLANES):
        if rows % cand == 0:
            block_rows = cand
            break
    grid = (rows // block_rows,)

    out2 = pl.pallas_call(
        _binary_classifier_kernel,
        out_shape=jax.ShapeDtypeStruct((rows, _LANES), jnp.float32),
        grid_spec=pltpu.PrefetchScalarGridSpec(
            num_scalar_prefetch=0,
            grid=grid,
            in_specs=[
                pl.BlockSpec(memory_space=pltpu.MemorySpace.SMEM),         # bias (1,)
                pl.BlockSpec((2 * _LANES, _LANES), lambda i: (0, 0)),      # w_big (resident)
                pl.BlockSpec((block_rows, 2 * _LANES), lambda i: (i, 0)),  # x tile
            ],
            out_specs=pl.BlockSpec((block_rows, _LANES), lambda i: (i, 0)),
        ),
        compiler_params=pltpu.CompilerParams(
            # Independent batch tiles: megacore / v7x 2-TC shardable.
            dimension_semantics=("parallel",),
            # Exact footprint ~6.6 MiB at the default tile; 16 MiB is safe on
            # all generations (== v5e scoped default, << v7x 64 MiB physical).
            vmem_limit_bytes=16 * 1024 * 1024,
        ),
    )(b_flat, w_big, x2)

    # Free relayout back to the PyTorch (B, 1) convention; drop batch padding.
    return out2.reshape(Bp, 1)[:B]


if __name__ == "__main__":
    key = jax.random.PRNGKey(0)
    kx, kw, kb = jax.random.split(key, 3)

    # Small shapes consistent with Linear(2, 1); B chosen to exercise the
    # multi-tile grid (grid=(2,)) and the pad-to-granule path (2000 -> 2048).
    B, IN, OUT = 2000, 2, 1
    bound = 1.0 / (IN ** 0.5)   # PyTorch-style uniform init range
    weight = jax.random.uniform(kw, (OUT, IN), jnp.float32, -bound, bound)
    bias = jax.random.uniform(kb, (OUT,), jnp.float32, -bound, bound)
    x = jax.random.normal(kx, (B, IN), jnp.float32)

    out = jax.block_until_ready(binary_classifier_forward(x, weight, bias))

    # Exact element-wise reference (no matmul, so the reference itself is f32-exact).
    ref = jax.nn.sigmoid(x[:, 0:1] * weight[0, 0] + x[:, 1:2] * weight[0, 1] + bias[0])
    assert out.shape == (B, OUT)
    max_err = float(jnp.max(jnp.abs(out - ref)))
    assert jnp.allclose(out, ref, atol=1e-4, rtol=1e-4), max_err

    print("KERNEL_OK")
</pallas_src>

<mosaic_0001>
module attributes {stable_mosaic.version = 11 : i64} {
  func.func @_binary_classifier_kernel(%arg0: i32, %arg1: memref<1xf32, #tpu.memory_space<smem>>, %arg2: memref<256x128xf32, #tpu.memory_space<vmem>>, %arg3: memref<8x256xf32, #tpu.memory_space<vmem>>, %arg4: memref<8x128xf32, #tpu.memory_space<vmem>>) attributes {dimension_semantics = [#tpu.dimension_semantics<parallel>], iteration_bounds = array<i64: 2>, scalar_prefetch = 0 : i64, scratch_operands = 0 : i64, tpu.core_type = #tpu.core_type<tc>, window_params = [{transform_indices = @transform_0, window_bounds = array<i64: 1>}, {pipeline_mode = #tpu.pipeline_mode<synchronous>, transform_indices = @transform_1, window_bounds = array<i64: 256, 128>}, {transform_indices = @transform_2, window_bounds = array<i64: 8, 256>}, {transform_indices = @transform_3, window_bounds = array<i64: 8, 128>}]} {
    %c0 = arith.constant 0 : index
    %0 = memref.load %arg1[%c0] : memref<1xf32, #tpu.memory_space<smem>>
    %c0_0 = arith.constant 0 : index
    %c0_1 = arith.constant 0 : index
    %1 = vector.load %arg3[%c0_0, %c0_1] : memref<8x256xf32, #tpu.memory_space<vmem>>, vector<8x256xf32>
    %c0_2 = arith.constant 0 : index
    %c0_3 = arith.constant 0 : index
    %2 = vector.load %arg2[%c0_2, %c0_3] : memref<256x128xf32, #tpu.memory_space<vmem>>, vector<256x128xf32>
    %cst = arith.constant dense<0.000000e+00> : vector<8x128xf32>
    %3 = tpu.matmul %1, %2, %cst {dimension_numbers = #tpu.dot_dimension_numbers<[1], [0], [0], [1], [0, 0, 1, 1], [], []>, precision = #tpu.contract_precision<fp32>} : vector<8x256xf32>, vector<256x128xf32>, vector<8x128xf32> -> vector<8x128xf32>
    %4 = vector.broadcast %0 : f32 to vector<8x128xf32>
    %5 = arith.addf %3, %4 : vector<8x128xf32>
    %cst_4 = arith.constant 5.000000e-01 : f32
    %6 = vector.broadcast %cst_4 : f32 to vector<8x128xf32>
    %7 = arith.mulf %6, %5 : vector<8x128xf32>
    %8 = math.tanh %7 : vector<8x128xf32>
    %cst_5 = arith.constant 5.000000e-01 : f32
    %9 = vector.broadcast %cst_5 : f32 to vector<8x128xf32>
    %10 = arith.mulf %9, %8 : vector<8x128xf32>
    %cst_6 = arith.constant 5.000000e-01 : f32
    %11 = vector.broadcast %cst_6 : f32 to vector<8x128xf32>
    %12 = arith.addf %10, %11 : vector<8x128xf32>
    %c0_7 = arith.constant 0 : index
    %c0_8 = arith.constant 0 : index
    %13 = vector.load %arg4[%c0_7, %c0_8] : memref<8x128xf32, #tpu.memory_space<vmem>>, vector<8x128xf32>
    tpu.vector_store %arg4[%c0_7, %c0_8], %12 {strides = array<i32>} : memref<8x128xf32, #tpu.memory_space<vmem>>, vector<8x128xf32>,
    return
  }
  func.func @transform_0(%arg0: i32) -> i32 {
    %c0_i32 = arith.constant 0 : i32
    %c0_i32_0 = arith.constant 0 : i32
    return %c0_i32 : i32
  }
  func.func @transform_1(%arg0: i32) -> (i32, i32) {
    %c0_i32 = arith.constant 0 : i32
    %c0_i32_0 = arith.constant 0 : i32
    %c0_i32_1 = arith.constant 0 : i32
    return %c0_i32, %c0_i32_0 : i32, i32
  }
  func.func @transform_2(%arg0: i32) -> (i32, i32) {
    %c0_i32 = arith.constant 0 : i32
    %c0_i32_0 = arith.constant 0 : i32
    return %arg0, %c0_i32 : i32, i32
  }
  func.func @transform_3(%arg0: i32) -> (i32, i32) {
    %c0_i32 = arith.constant 0 : i32
    %c0_i32_0 = arith.constant 0 : i32
    return %arg0, %c0_i32 : i32, i32
  }
}

</mosaic_0001>

<bundles_post_ra>
// kernel: tpu_custom_call.1
= control target key start
LH: loop header
LB: loop body
LE: loop exit
PB: predicated region body
PF: predicated region fallthrough
CT: control target
= control target key end

     0   :  { %s1910_s0 = inlined_call_operand.<no memory space> [shape: f32[1], index: 0, kind: input, shape index: {}]   ;;  %s1911_s1 = inlined_call_operand.hbm [shape: f32[256,128], index: 1, kind: input, shape index: {}]   ;;  %s1912_s2 = inlined_call_operand.hbm [shape: f32[16,256], index: 2, kind: input, shape index: {}]   ;;  %s1913_s3 = inlined_call_operand.hbm [shape: f32[16,128], index: 3, kind: output, shape index: {}]  }
   0x1   :  { %8 = sst [smem:[#allocation2]] %s1910_s0 }
   0x2   :  { %9 = vsyncpa [#allocation4], 0 }
   0x3   :  { %10 = vsyncpa [#allocation7], 0 }
   0x4   :  { %12 = vsyncpa [#allocation7 + $0x1], 0 }
   0x5   :  { %13 = vsyncpa [#allocation5], 0 }
   0x6   :  { %15 = vsyncpa [#allocation5 + $0x1], 0  ;;  %s1263_s14 = smov 0   ;;  %s1265_s15 = smov 0  }
   0x7   :  { %s1267_s16 = smov 0   ;;  %s1269_s17 = smov 0  }
   0x8 LB: > { %s134_s19 = sshll.u32 %s1911_s1, 4  ;;  %s1287_s20 = sadd.s32 4294967295, %s1235_s17   ;;  %s1235_s17 = sphi %s1269_s17, %s1978_s17   ;;  %s1231_s16 = sphi %s1267_s16, %s1977_s16   ;;  %s1227_s15 = sphi %s1265_s15, %s1976_s15   ;;  %s1223_s14 = sphi %s1263_s14, %s1975_s14   ;;  %s135_s19 = int_to_ptr.hbm [resolvable:$true] %s134_s19 }
   0x9   : > { %p1029_p0 = scmp.ge.s32.totalorder %s1235_s17, 1  ;;  %p84_p1 = scmp.eq.s32.totalorder %s1287_s20, 0 }
   0xa   : > { %p120_p2 = scmp.lt.s32.totalorder %s1235_s17, 3  ;;  %s1237_s22 = smov [#allocation3]  }
   0xb   : > { %s136_s23 = sshll.u32 %s1237_s22, 4  ;;  %s1238_s24 = smov 128   ;;  %s137_s23 = int_to_ptr.vmem [resolvable:$true] %s136_s23 }
   0xc   : > { %p1292_p3 = pnand %p1029_p0, %p120_p2  ;;  %s1239_s25 = smov 8  }
   0xd   : > { %s1028_s26 = sadd.s32 4294967294, %s1235_s17   ;;  %s1303_s27 = sadd.s32 1, %s1235_s17  }
   0xe   : > { %p1052_p4 = pneg %p1292_p3  ;;  %s70_s28 = sadd.s32 1, %s1231_s16 }
   0xf   : > { %s67_s29 = ssub.s32 %s1235_s17, %s1303_s27  ;;  %p77_p7 = scmp.ne.s32.totalorder %s1231_s16, %s1227_s15 }
  0x10   : > { %p1053_p6 = pnand %p1052_p4, %p84_p1  ;;  %p68_p8 = scmp.eq.s32.totalorder %s67_s29, 0 }
  0x11   : > { %p78_p9 = scmp.eq.s32.totalorder %s1235_s17, 0  ;;  %p83_p10 = scmp.ne.s32.totalorder %s1227_s15, %s1223_s14 }
  0x12   : > { %1055 = dma.hbm_to_vmem [thread:$0]  (!%p1053_p6), %s135_s19, 4096, %s137_s23, [#allocation4], %s1238_s24, %s1238_s24, %s1239_s25  }
  0x13   : > { %p107_p11 = scmp.eq.s32.totalorder %s1287_s20, 1  ;;  %p1319_p12 = por %p84_p1, %p83_p10 }
  0x14   : > { %s1315_s30 = scalar_select %p68_p8, %s1231_s16, %s70_s28  }
  0x15   : > { %p1323_p13 = por %p107_p11, %p77_p7  ;;  %p113_p0 = scmp.eq.s32.totalorder %s1028_s26, 1 }
  0x16   : > { %p79_p2 = por %p78_p9, %p77_p7  ;;  %s150_s6 = sand.u32 1, %s1231_s16  }
  0x17   : > { %p1328_p4 = por %p113_p0, %p83_p10  ;;  %p1065_p6 = scmp.lt.s32.totalorder %s1235_s17, 2 }
  0x18   : > { %s1032_s8 = sshll.u32 %s150_s6, 4  ;;  %s1043_s9 = sshll.u32 %s1235_s17, 4 }
  0x19   : > { %s159_s12 = scalar_lea.hbm %s1912_s2, %s1043_s9  ;;  %s154_s0 = scalar_lea.vmem [#allocation6], %s1032_s8 }
  0x1a   : > { %s161_s13 = sshll.u32 %s159_s12, 4  ;;  %s163_s18 = sshll.u32 %s154_s0, 4  ;;  %s162_s13 = int_to_ptr.hbm [resolvable:$true] %s161_s13  ;;  %s164_s18 = int_to_ptr.vmem [resolvable:$true] %s163_s18 }
  0x1b   : > { %p1337_p8 = pnand %p1065_p6, %p79_p2  ;;  %s151_s22 = scalar_lea.sflag [#allocation7], %s150_s6 }
  0x1c   : > { %s1135_s23 = sshra.s32 %s162_s13, 4  ;;  %s1142_s28 = scalar_lea.hbm %s1912_s2, 32  ;;  %s1136_s23 = int_to_ptr.hbm [resolvable:$true] %s1135_s23 }
  0x1d   : > { %s1137_s24 = scalar_lea.hbm %s1136_s23, 16  ;;  %p1139_p9 = pneg %p1337_p8 }
  0x1e   : > { %p1138_p7 = scmp.ne.s32.totalorder %s1136_s23, %s1137_s24  ;;  %p1143_p0 = scmp.lt.s32.totalorder %s1136_s23, %s1912_s2 }
  0x1f   : > { %p1144_p2 = scmp.lt.s32.totalorder %s1142_s28, %s1137_s24 }
  0x20   : > { %p1140_p10 = pnand %p1139_p9, %p1138_p7 }
  0x21   : > { %p1145_p6 = por %p1144_p2, %p1143_p0 }
  0x22   : > { %p1141_p11 = pneg %p1140_p10 }
  0x24   : > { %p1146_p5 = pnand %p1145_p6, %p1141_p11 }
  0x26   : > { %1149 = shalt.err (!%p1146_p5)
}
  0x27   : > { %1059 = dma.hbm_to_vmem [thread:$0]  (!%p1337_p8), %s162_s13, 256, %s164_s18, %s151_s22  }
  0x28   : > { %172 = sbr.rel (%p1292_p3) target bundleno = 307 (0x133), region = 32 }
  0x2d   : > { %1210 = dma.done.wait (%p84_p1), [#allocation4], 4096  }
  0x2e   : > { %1212 = vsyncadd (%p84_p1), [#allocation4], 4294963200  ;;  %s1358_s6 = sand.u32 1, %s1227_s15  }
  0x2f   : > { %s1037_s9 = sshll.u32 %s1358_s6, 4  ;;  %s180_s10 = scalar_lea.sflag [#allocation7], %s1358_s6 }
  0x30   : > { %s1362_s11 = scalar_lea.vmem [#allocation6], %s1037_s9 }
  0x31   : > { %1214 = dma.done.wait (%p1319_p12), %s180_s10, 256  }
  0x32   : > { %1216 = vsyncadd (%p1319_p12), %s180_s10, 4294967040  ;;  %v225_v0 = vld [vmem:[#allocation3 + $0x78] sm:$0xff]  ;;  %v224_v1 = vld [vmem:[#allocation3 + $0x70] sm:$0xff]  ;;  %s207_s21 = sld [smem:[#allocation2]]  ;;  %s1038_s4 = sshll.u32 %s1358_s6, 3 }
  0x33   : > { %v223_v2 = vld [vmem:[#allocation3 + $0x68] sm:$0xff]  ;;  %v1368_v3 = vand.u32 4294901760, %v225_v0  ;;  %v1370_v4 = vand.u32 4294901760, %v224_v1  ;;  %v222_v6 = vld [vmem:[#allocation3 + $0x60] sm:$0xff]  ;;  %v221_v7 = vld [vmem:[#allocation3 + $0x58] sm:$0xff]  ;;  %s1040_s12 = sshll.u32 %s1287_s20, 3 }
  0x34   : > { %v1372_v5 = vand.u32 4294901760, %v223_v2  ;;  %v220_v8 = vld [vmem:[#allocation3 + $0x50] sm:$0xff]  ;;  %v1374_v9 = vand.u32 4294901760, %v222_v6  ;;  %v1376_v10 = vand.u32 4294901760, %v221_v7  ;;  %v219_v12 = vld [vmem:[#allocation3 + $0x48] sm:$0xff]  ;;  %v218_v13 = vld [vmem:[#allocation3 + $0x40] sm:$0xff]  ;;  %s941_s18 = scalar_lea.hbm %s1913_s3, %s1040_s12 }
  0x35   : > { %v1378_v11 = vand.u32 4294901760, %v220_v8  ;;  %244 = vmatpush.msra.mxu0 %v1368_v3  ;;  %v1382_v14 = vsub.f32 %v225_v0, %v1368_v3  ;;  %v1385_v15 = vsub.f32 %v224_v1, %v1370_v4  ;;  %440 = vmatpush.msra.mxu3 %v1368_v3  ;;  %v1391_v17 = vand.u32 4294901760, %v219_v12  ;;  %v217_v21 = vld [vmem:[#allocation3 + $0x38] sm:$0xff]  ;;  %v216_v26 = vld [vmem:[#allocation3 + $0x30] sm:$0xff]  ;;  %v215_v36 = vld [vmem:[#allocation3 + $0x28] sm:$0xff]  ;;  %s206_s19 = scalar_lea.vmem [#allocation8], %s1038_s4 }
  0x36   : > { %v1389_v16 = vsub.f32 %v223_v2, %v1372_v5  ;;  %v1394_v18 = vsub.f32 %v222_v6, %v1374_v9  ;;  %v1397_v19 = vsub.f32 %v221_v7, %v1376_v10  ;;  %v1407_v25 = vand.u32 4294901760, %v218_v13  ;;  %v214_v42 = vld [vmem:[#allocation3 + $0x20] sm:$0xff]  ;;  %v213_v47 = vld [vmem:[#allocation3 + $0x18] sm:$0xff]  ;;  %v212_v54 = vld [vmem:[#allocation3 + $0x10] sm:$0xff]  ;;  %s943_s22 = sshll.u32 %s206_s19, 4  ;;  %s945_s23 = sshll.u32 %s941_s18, 4  ;;  %s944_s22 = int_to_ptr.vmem [resolvable:$true] %s943_s22  ;;  %s946_s23 = int_to_ptr.hbm [resolvable:$true] %s945_s23 }
  0x37   : > { %v1400_v20 = vsub.f32 %v220_v8, %v1378_v11  ;;  %246 = vmatpush.msra.mxu0 %v1370_v4  ;;  %387 = vmatpush.msra.mxu2 %v1382_v14  ;;  %v286_v22 = vand.u32 4294901760, %v1382_v14  ;;  %v1929_v23 = vand.u32 4294901760, %v1385_v15  ;;  %v1413_v29 = vsub.f32 %v219_v12, %v1391_v17  ;;  %v241_v59 = vld [vmem:[#allocation3 + $0xf8] sm:$0xff]  ;;  %v211_v61 = vld [vmem:[#allocation3 + $0x8] sm:$0xff]  ;;  %v210_v2 = vld [vmem:[#allocation3] sm:$0xff]  ;;  %s931_s24 = scalar_lea.sflag [#allocation5], %s1358_s6 }
  0x38   : > { %v1927_v24 = vand.u32 4294901760, %v1389_v16  ;;  %442 = vmatpush.msra.mxu3 %v1370_v4  ;;  %v1926_v27 = vand.u32 4294901760, %v1394_v18  ;;  %v1923_v28 = vand.u32 4294901760, %v1397_v19  ;;  %v1426_v33 = vand.u32 4294901760, %v217_v21  ;;  %v240_v6 = vld [vmem:[#allocation3 + $0xf0] sm:$0xff]  ;;  %s1179_s25 = sshra.s32 %s946_s23, 4  ;;  %s1180_s25 = int_to_ptr.hbm [resolvable:$true] %s1179_s25 }
  0x39   : > { %248 = vmatpush.msra.mxu0 %v1372_v5  ;;  %390 = vmatpush.msra.mxu2 %v1385_v15  ;;  %v287_v30 = vsub.f32 %v1382_v14, %v286_v22  ;;  %v293_v31 = vsub.f32 %v1385_v15, %v1929_v23  ;;  %v1429_v34 = vand.u32 4294901760, %v216_v26  ;;  %v1921_v35 = vand.u32 4294901760, %v1400_v20  ;;  %s1181_s26 = scalar_lea.hbm %s1180_s25, 8  ;;  %s1185_s29 = scalar_lea.hbm %s1913_s3, 16 }
  0x3a   : > { %v299_v32 = vsub.f32 %v1389_v16, %v1927_v24  ;;  %444 = vmatpush.msra.mxu3 %v1372_v5  ;;  %v305_v39 = vsub.f32 %v1394_v18, %v1926_v27  ;;  %v1438_v40 = vsub.f32 %v218_v13, %v1407_v25  ;;  %v311_v41 = vsub.f32 %v1397_v19, %v1923_v28  ;;  %p1182_p1 = scmp.ne.s32.totalorder %s1180_s25, %s1181_s26  ;;  %p1186_p12 = scmp.lt.s32.totalorder %s1180_s25, %s1913_s3 }
  0x3b   : > { %250 = vmatpush.msra.mxu0 %v1374_v9  ;;  %v288_v37 = vand.u32 4294901760, %v287_v30  ;;  %393 = vmatpush.msra.mxu2 %v1389_v16  ;;  %v294_v38 = vand.u32 4294901760, %v293_v31  ;;  %v1445_v44 = vand.u32 4294901760, %v215_v36  ;;  %v1920_v45 = vand.u32 4294901760, %v1413_v29  ;;  %p1187_p8 = scmp.lt.s32.totalorder %s1185_s29, %s1181_s26 }
  0x3c   : > { %446 = vmatpush.msra.mxu3 %v1374_v9  ;;  %v300_v43 = vand.u32 4294901760, %v299_v32  ;;  %v1449_v46 = vsub.f32 %v217_v21, %v1426_v33  ;;  %v317_v48 = vsub.f32 %v1400_v20, %v1921_v35  ;;  %v306_v49 = vand.u32 4294901760, %v305_v39  ;;  %v239_v32 = vld [vmem:[#allocation3 + $0xe8] sm:$0xff]  ;;  %p1183_p3 = pnand %p1182_p1, %p1323_p13 }
  0x3d   : > { %252 = vmatpush.msra.mxu0 %v1376_v10  ;;  %289 = vmatpush.msra.mxu1 %v288_v37  ;;  %v1457_v50 = vand.u32 4294901760, %v214_v42  ;;  %v1919_v51 = vand.u32 4294901760, %v1438_v40  ;;  %v1461_v52 = vsub.f32 %v216_v26, %v1429_v34  ;;  %v1465_v53 = vand.u32 4294901760, %v213_v47  ;;  %p1188_p7 = por %p1187_p8, %p1186_p12 }
  0x3e   : > { %396 = vmatpush.msra.mxu2 %v1394_v18  ;;  %448 = vmatpush.msra.mxu3 %v1376_v10  ;;  %v312_v55 = vand.u32 4294901760, %v311_v41  ;;  %v323_v56 = vsub.f32 %v1413_v29, %v1920_v45  ;;  %v1918_v57 = vand.u32 4294901760, %v1449_v46  ;;  %v1473_v58 = vsub.f32 %v215_v36, %v1445_v44  ;;  %v234_v45 = vld [vmem:[#allocation3 + $0xc0] sm:$0xff]  ;;  %p1184_p5 = pneg %p1183_p3 }
  0x3f   : > { %254 = vmatpush.msra.mxu0 %v1378_v11  ;;  %295 = vmatpush.msra.mxu1 %v294_v38  ;;  %v318_v60 = vand.u32 4294901760, %v317_v48  ;;  %v329_v62 = vsub.f32 %v1438_v40, %v1919_v51  ;;  %v1481_v63 = vand.u32 4294901760, %v212_v54  ;;  %v1917_v0 = vand.u32 4294901760, %v1461_v52 }
  0x40   : > { %399 = vmatpush.msra.mxu2 %v1397_v19  ;;  %450 = vmatpush.msra.mxu3 %v1378_v11  ;;  %v1485_v1 = vsub.f32 %v214_v42, %v1457_v50  ;;  %v1490_v7 = vsub.f32 %v213_v47, %v1465_v53  ;;  %v1492_v8 = vand.u32 4294901760, %v241_v59  ;;  %v324_v12 = vand.u32 4294901760, %v323_v56  ;;  %p1189_p9 = pnand %p1188_p7, %p1184_p5 }
  0x41   : > { %256 = vmatpush.msra.mxu0 %v1391_v17  ;;  %301 = vmatpush.msra.mxu1 %v300_v43  ;;  %v335_v13 = vsub.f32 %v1449_v46, %v1918_v57  ;;  %v1498_v21 = vand.u32 4294901760, %v211_v61  ;;  %v1915_v26 = vand.u32 4294901760, %v1473_v58  ;;  %v1503_v30 = vand.u32 4294901760, %v210_v2  ;;  %v238_v43 = vld [vmem:[#allocation3 + $0xe0] sm:$0xff]  ;;  %v235_v57 = vld [vmem:[#allocation3 + $0xc8] sm:$0xff] }
  0x42   : > { %402 = vmatpush.msra.mxu2 %v1400_v20  ;;  %452 = vmatpush.msra.mxu3 %v1391_v17  ;;  %v1505_v31 = vand.u32 4294901760, %v240_v6  ;;  %v330_v36 = vand.u32 4294901760, %v329_v62  ;;  %v341_v37 = vsub.f32 %v1461_v52, %v1917_v0  ;;  %v1914_v38 = vand.u32 4294901760, %v1485_v1 }
  0x43   : > { %258 = vmatpush.msra.mxu0 %v1407_v25  ;;  %307 = vmatpush.msra.mxu1 %v306_v49  ;;  %1937 = vst [vmem:[#allocation12_spill] sm:$0xff] %v1503_v30  ;;  %v1513_v39 = vsub.f32 %v212_v54, %v1481_v63  ;;  %v1916_v41 = vand.u32 4294901760, %v1490_v7  ;;  %v1519_v42 = vsub.f32 %v241_v59, %v1492_v8  ;;  %v336_v47 = vand.u32 4294901760, %v335_v13  ;;  %v237_v59 = vld [vmem:[#allocation3 + $0xd8] sm:$0xff]  ;;  %v236_v13 = vld [vmem:[#allocation3 + $0xd0] sm:$0xff] }
  0x44   : > { %405 = vmatpush.msra.mxu2 %v1413_v29  ;;  %454 = vmatpush.msra.mxu3 %v1407_v25  ;;  %v347_v48 = vsub.f32 %v1473_v58, %v1915_v26  ;;  %v1526_v49 = vsub.f32 %v211_v61, %v1498_v21  ;;  %v1528_v54 = vand.u32 4294901760, %v239_v32  ;;  %v1536_v56 = vsub.f32 %v240_v6, %v1505_v31 }
  0x45   : > { %260 = vmatpush.msra.mxu0 %v1426_v33  ;;  %313 = vmatpush.msra.mxu1 %v312_v55  ;;  %v1533_v55 = vsub.f32 %v210_v2, %v1503_v30  ;;  %v353_v61 = vsub.f32 %v1485_v1, %v1914_v38  ;;  %v1922_v62 = vand.u32 4294901760, %v1513_v39  ;;  %v359_v2 = vsub.f32 %v1490_v7, %v1916_v41 }
  0x46   : > { %408 = vmatpush.msra.mxu2 %v1438_v40  ;;  %456 = vmatpush.msra.mxu3 %v1426_v33  ;;  %v1924_v6 = vand.u32 4294901760, %v1519_v42  ;;  %v1554_v38 = vsub.f32 %v239_v32, %v1528_v54  ;;  %v1556_v26 = vand.u32 4294901760, %v237_v59  ;;  %v1928_v0 = vand.u32 4294901760, %v1536_v56 }
  0x47   : > { %262 = vmatpush.msra.mxu0 %v1429_v34  ;;  %319 = vmatpush.msra.mxu1 %v318_v60  ;;  %v342_v60 = vand.u32 4294901760, %v341_v37  ;;  %v1925_v37 = vand.u32 4294901760, %v1526_v49  ;;  %v1930_v41 = vand.u32 4294901760, %v1533_v55  ;;  %v365_v32 = vsub.f32 %v1513_v39, %v1922_v62 }
  0x48   : > { %411 = vmatpush.msra.mxu2 %v1449_v46  ;;  %458 = vmatpush.msra.mxu3 %v1429_v34  ;;  %v1569_v51 = vand.u32 4294901760, %v236_v13  ;;  %v360_v35 = vand.u32 4294901760, %v359_v2  ;;  %v1582_v62 = vsub.f32 %v237_v59, %v1556_v26  ;;  %v1584_v28 = vand.u32 4294901760, %v235_v57  ;;  %v233_v2 = vld [vmem:[#allocation3 + $0xb8] sm:$0xff] }
  0x49   : > { %264 = vmatpush.msra.mxu0 %v1445_v44  ;;  %325 = vmatpush.msra.mxu1 %v324_v12  ;;  %v1543_v12 = vand.u32 4294901760, %v238_v43  ;;  %v377_v59 = vsub.f32 %v1533_v55, %v1930_v41  ;;  %v1604_v23 = vand.u32 4294901760, %v233_v2  ;;  %v1939_v14 = vand.u32 4294901760, %v1385_v15 }
  0x4a   : > { %414 = vmatpush.msra.mxu2 %v1461_v52  ;;  %460 = vmatpush.msra.mxu3 %v1445_v44  ;;  %v1599_v24 = vsub.f32 %v236_v13, %v1569_v51  ;;  %v1612_v27 = vsub.f32 %v235_v57, %v1584_v28  ;;  %v1941_v15 = vand.u32 4294901760, %v1389_v16  ;;  %v1943_v16 = vand.u32 4294901760, %v1394_v18 }
  0x4b   : > { %266 = vmatpush.msra.mxu0 %v1457_v50  ;;  %331 = vmatpush.msra.mxu1 %v330_v36  ;;  %v348_v36 = vand.u32 4294901760, %v347_v48  ;;  %v1567_v48 = vsub.f32 %v238_v43, %v1543_v12  ;;  %v371_v43 = vsub.f32 %v1526_v49, %v1925_v37  ;;  %v366_v37 = vand.u32 4294901760, %v365_v32 }
  0x4c   : > { %417 = vmatpush.msra.mxu2 %v1473_v58  ;;  %462 = vmatpush.msra.mxu3 %v1457_v50  ;;  %v1938_v32 = vand.u32 4294901760, %v1554_v38  ;;  %v1945_v18 = vand.u32 4294901760, %v1397_v19  ;;  %v1947_v19 = vand.u32 4294901760, %v1400_v20  ;;  %v1949_v20 = vand.u32 4294901760, %v1413_v29 }
  0x4d   : > { %268 = vmatpush.msra.mxu0 %v1465_v53  ;;  %337 = vmatpush.msra.mxu1 %v336_v47  ;;  %v354_v47 = vand.u32 4294901760, %v353_v61  ;;  %v232_v61 = vld [vmem:[#allocation3 + $0xb0] sm:$0xff]  ;;  %v1951_v29 = vand.u32 4294901760, %v1438_v40  ;;  %v1953_v40 = vand.u32 4294901760, %v1449_v46  ;;  %v1955_v46 = vand.u32 4294901760, %v1461_v52 }
  0x4e   : > { %420 = vmatpush.msra.mxu2 %v1485_v1  ;;  %464 = vmatpush.msra.mxu3 %v1465_v53  ;;  %v640_v41 = vsub.f32 %v1554_v38, %v1938_v32  ;;  %v1940_v32 = vand.u32 4294901760, %v1567_v48 }
  0x4f   : > { %270 = vmatpush.msra.mxu0 %v1481_v63  ;;  %343 = vmatpush.msra.mxu1 %v342_v60  ;;  %v628_v60 = vsub.f32 %v1519_v42, %v1924_v6  ;;  %v1591_v6 = vand.u32 4294901760, %v234_v45 }
  0x50   : > { %423 = vmatpush.msra.mxu2 %v1490_v7  ;;  %466 = vmatpush.msra.mxu3 %v1481_v63  ;;  %v646_v13 = vsub.f32 %v1567_v48, %v1940_v32 }
  0x51   : > { %272 = vmatpush.msra.mxu0 %v1498_v21  ;;  %349 = vmatpush.msra.mxu1 %v348_v36  ;;  %v634_v36 = vsub.f32 %v1536_v56, %v1928_v0  ;;  %v629_v0 = vand.u32 4294901760, %v628_v60  ;;  %v231_v60 = vld [vmem:[#allocation3 + $0xa8] sm:$0xff] }
  0x52   : > { %426 = vmatpush.msra.mxu2 %v1513_v39  ;;  %468 = vmatpush.msra.mxu3 %v1498_v21  ;;  %v1637_v57 = vand.u32 4294901760, %v231_v60 }
  0x53   : > { %274 = vmatpush.msra.mxu0 %v1503_v30  ;;  %355 = vmatpush.msra.mxu1 %v354_v47  ;;  %v372_v47 = vand.u32 4294901760, %v371_v43  ;;  %v378_v43 = vand.u32 4294901760, %v377_v59  ;;  %v1942_v59 = vand.u32 4294901760, %v1582_v62 }
  0x54   : > { %429 = vmatpush.msra.mxu2 %v1526_v49  ;;  %470 = vmatpush.msra.mxu3 %v1503_v30  ;;  %v1625_v30 = vand.u32 4294901760, %v232_v61 }
  0x55   : > { %481 = vmatpush.msrb.mxu0 %v286_v22  ;;  %361 = vmatpush.msra.mxu1 %v360_v35  ;;  %v635_v22 = vand.u32 4294901760, %v634_v36  ;;  %v1618_v35 = vsub.f32 %v234_v45, %v1591_v6  ;;  %v1630_v45 = vsub.f32 %v233_v2, %v1604_v23  ;;  %v230_v36 = vld [vmem:[#allocation3 + $0xa0] sm:$0xff]  ;;  %v229_v2 = vld [vmem:[#allocation3 + $0x98] sm:$0xff] }
  0x56   : > { %432 = vmatpush.msra.mxu2 %v1533_v55  ;;  %630 = vmatpush.msrb.mxu3 %v629_v0  ;;  %v1649_v32 = vand.u32 4294901760, %v230_v36  ;;  %v1663_v0 = vand.u32 4294901760, %v229_v2 }
  0x57   : > { %485 = vmatpush.msrb.mxu0 %v1939_v14  ;;  %367 = vmatpush.msra.mxu1 %v366_v37  ;;  %v641_v37 = vand.u32 4294901760, %v640_v41  ;;  %v652_v14 = vsub.f32 %v1582_v62, %v1942_v59  ;;  %v647_v41 = vand.u32 4294901760, %v646_v13  ;;  %v1647_v59 = vsub.f32 %v232_v61, %v1625_v30 }
  0x58   : > { %585 = vmatpush.msrb.mxu2 %v1492_v8  ;;  %636 = vmatpush.msrb.mxu3 %v635_v22  ;;  %v1661_v61 = vsub.f32 %v231_v60, %v1637_v57  ;;  %v1674_v60 = vsub.f32 %v230_v36, %v1649_v32 }
  0x59   : > { %489 = vmatpush.msrb.mxu0 %v1941_v15  ;;  %373 = vmatpush.msra.mxu1 %v372_v47  ;;  %v1944_v47 = vand.u32 4294901760, %v1599_v24  ;;  %v653_v13 = vand.u32 4294901760, %v652_v14 }
  0x5a   : > { %587 = vmatpush.msrb.mxu2 %v1505_v31  ;;  %642 = vmatpush.msrb.mxu3 %v641_v37  ;;  %v228_v37 = vld [vmem:[#allocation3 + $0x90] sm:$0xff] }
  0x5b   : > { %493 = vmatpush.msrb.mxu0 %v1943_v16  ;;  %379 = vmatpush.msra.mxu1 %v378_v43  ;;  %v658_v15 = vsub.f32 %v1599_v24, %v1944_v47  ;;  %v208_v43 = vld [vmem:[%s1362_s11] sm:$0xff]  ;;  %v1946_v16 = vand.u32 4294901760, %v1612_v27  ;;  %v1686_v36 = vand.u32 4294901760, %v228_v37 }
  0x5c   : > { %589 = vmatpush.msrb.mxu2 %v1528_v54  ;;  %648 = vmatpush.msrb.mxu3 %v647_v41  ;;  %v1676_v22 = vand.u32 4294901760, %v208_v43 }
  0x5d   : > { %497 = vmatpush.msrb.mxu0 %v1945_v18  ;;  %548 = vmatpush.msrb.mxu1 %v1368_v3  ;;  %v664_v47 = vsub.f32 %v1612_v27, %v1946_v16  ;;  %v1948_v3 = vand.u32 4294901760, %v1618_v35  ;;  %v659_v14 = vand.u32 4294901760, %v658_v15  ;;  %v1689_v16 = vsub.f32 %v229_v2, %v1663_v0 }
  0x5e   : > { %591 = vmatpush.msrb.mxu2 %v1543_v12  ;;  %654 = vmatpush.msrb.mxu3 %v653_v13  ;;  %v1952_v13 = vand.u32 4294901760, %v1647_v59  ;;  %v1700_v15 = vsub.f32 %v208_v43, %v1676_v22  ;;  %v1713_v43 = vsub.f32 %v228_v37, %v1686_v36 }
  0x5f   : > { %501 = vmatpush.msrb.mxu0 %v1947_v19  ;;  %550 = vmatpush.msrb.mxu1 %v1370_v4  ;;  %v670_v18 = vsub.f32 %v1618_v35, %v1948_v3  ;;  %v1950_v4 = vand.u32 4294901760, %v1630_v45  ;;  %v227_v3 = vld [vmem:[#allocation3 + $0x88] sm:$0xff]  ;;  %v665_v41 = vand.u32 4294901760, %v664_v47 }
  0x60   : > { %593 = vmatpush.msrb.mxu2 %v1556_v26  ;;  %660 = vmatpush.msrb.mxu3 %v659_v14  ;;  %v682_v47 = vsub.f32 %v1647_v59, %v1952_v13  ;;  %v1702_v2 = vand.u32 4294901760, %v227_v3 }
  0x61   : > { %505 = vmatpush.msrb.mxu0 %v1949_v20  ;;  %552 = vmatpush.msrb.mxu1 %v1372_v5  ;;  %v676_v19 = vsub.f32 %v1630_v45, %v1950_v4  ;;  %v671_v5 = vand.u32 4294901760, %v670_v18  ;;  %v226_v20 = vld [vmem:[#allocation3 + $0x80] sm:$0xff]  ;;  %v693_v4 = vand.u32 4294901760, %v1674_v60  ;;  %v1954_v18 = vand.u32 4294901760, %v1661_v61 }
  0x62   : > { %595 = vmatpush.msrb.mxu2 %v1569_v51  ;;  %666 = vmatpush.msrb.mxu3 %v665_v41  ;;  %v1715_v13 = vand.u32 4294901760, %v226_v20  ;;  %v277_v41 = vand.u32 4294901760, %v1700_v15  ;;  %v1726_v37 = vsub.f32 %v227_v3, %v1702_v2  ;;  %v1957_v3 = vand.u32 4294901760, %v1485_v1 }
  0x63   : > { %509 = vmatpush.msrb.mxu0 %v1951_v29  ;;  %554 = vmatpush.msrb.mxu1 %v1374_v9  ;;  %v677_v9 = vand.u32 4294901760, %v676_v19  ;;  %v688_v14 = vsub.f32 %v1661_v61, %v1954_v18  ;;  %v699_v29 = vand.u32 4294901760, %v1689_v16  ;;  %v694_v19 = vsub.f32 %v1674_v60, %v693_v4 }
  0x64   : > { %597 = vmatpush.msrb.mxu2 %v1584_v28  ;;  %672 = vmatpush.msrb.mxu3 %v671_v5  ;;  %v705_v5 = vand.u32 4294901760, %v1713_v43  ;;  %v711_v18 = vand.u32 4294901760, %v1726_v37 }
  0x65   : > { %513 = vmatpush.msrb.mxu0 %v1953_v40  ;;  %556 = vmatpush.msrb.mxu1 %v1376_v10  ;;  %v683_v10 = vand.u32 4294901760, %v682_v47  ;;  %v1956_v40 = vand.u32 4294901760, %v1473_v58  ;;  %v700_v52 = vsub.f32 %v1689_v16, %v699_v29  ;;  %v1737_v47 = vsub.f32 %v226_v20, %v1715_v13  ;;  %v209_v58 = vld [vmem:[%s1362_s11 + $0x8] sm:$0xff] }
  0x66   : > { %599 = vmatpush.msrb.mxu2 %v1591_v6  ;;  %678 = vmatpush.msrb.mxu3 %v677_v9  ;;  %v278_v9 = vsub.f32 %v1700_v15, %v277_v41 }
  0x67   : > { %517 = vmatpush.msrb.mxu0 %v1955_v46  ;;  %558 = vmatpush.msrb.mxu1 %v1378_v11  ;;  %v689_v11 = vand.u32 4294901760, %v688_v14  ;;  %v1958_v14 = vand.u32 4294901760, %v1490_v7  ;;  %v701_v1 = vand.u32 4294901760, %v700_v52  ;;  %v717_v20 = vand.u32 4294901760, %v1737_v47 }
  0x68   : > { %601 = vmatpush.msrb.mxu2 %v1604_v23  ;;  %684 = vmatpush.msrb.mxu3 %v683_v10  ;;  %v1754_v46 = vand.u32 4294901760, %v209_v58  ;;  %v1959_v10 = vand.u32 4294901760, %v1513_v39  ;;  %v712_v7 = vsub.f32 %v1726_v37, %v711_v18 }
  0x69   : > { %521 = vmatpush.msrb.mxu0 %v1956_v40  ;;  %560 = vmatpush.msrb.mxu1 %v1391_v17  ;;  %v695_v17 = vand.u32 4294901760, %v694_v19  ;;  %v1960_v19 = vand.u32 4294901760, %v1526_v49 }
  0x6a   : > { %603 = vmatpush.msrb.mxu2 %v1625_v30  ;;  %690 = vmatpush.msrb.mxu3 %v689_v11  ;;  %v1771_v40 = vsub.f32 %v209_v58, %v1754_v46  ;;  %v1961_v11 = vand.u32 4294901760, %v1533_v55  ;;  %v1964_v55 = vld [vmem:[#allocation12_spill] sm:$0xff] }
  0x6b   : > { %525 = vmatpush.msrb.mxu0 %v1957_v3  ;;  %562 = vmatpush.msrb.mxu1 %v1407_v25  ;;  %v706_v25 = vsub.f32 %v1713_v43, %v705_v5 }
  0x6c   : > { %605 = vmatpush.msrb.mxu2 %v1637_v57  ;;  %696 = vmatpush.msrb.mxu3 %v695_v17  ;;  %v618_v52 = vand.u32 4294901760, %v1771_v40 }
  0x6d   : > { %529 = vmatpush.msrb.mxu0 %v1958_v14  ;;  %564 = vmatpush.msrb.mxu1 %v1426_v33  ;;  %v279_v33 = vand.u32 4294901760, %v278_v9  ;;  %v707_v39 = vand.u32 4294901760, %v706_v25 }
  0x6e   : > { %607 = vmatpush.msrb.mxu2 %v1649_v32  ;;  %702 = vmatpush.msrb.mxu3 %v701_v1 }
  0x6f   : > { %533 = vmatpush.msrb.mxu0 %v1959_v10  ;;  %566 = vmatpush.msrb.mxu1 %v1429_v34  ;;  %v718_v34 = vsub.f32 %v1737_v47, %v717_v20 }
  0x70   : > { %609 = vmatpush.msrb.mxu2 %v1663_v0  ;;  %280 = vmatmul.f32.vlgmr.msra.gmra.mxu0 %v279_v33 }
  0x71   : > { %537 = vmatpush.msrb.mxu0 %v1960_v19  ;;  %568 = vmatpush.msrb.mxu1 %v1445_v44  ;;  %v713_v44 = vand.u32 4294901760, %v712_v7  ;;  %v719_v49 = vand.u32 4294901760, %v718_v34 }
  0x72   : > { %611 = vmatpush.msrb.mxu2 %v1686_v36  ;;  %708 = vmatpush.msrb.mxu3 %v707_v39 }
  0x73   : > { %541 = vmatpush.msrb.mxu0 %v1961_v11  ;;  %570 = vmatpush.msrb.mxu1 %v1457_v50  ;;  %v1962_v50 = vand.u32 4294901760, %v1519_v42 }
  0x74   : > { %613 = vmatpush.msrb.mxu2 %v1702_v2  ;;  %714 = vmatpush.msrb.mxu3 %v713_v44 }
  0x75   : > { %728 = vmatpush.msra.mxu0 %v1519_v42  ;;  %572 = vmatpush.msrb.mxu1 %v1465_v53  ;;  %v619_v53 = vsub.f32 %v1771_v40, %v618_v52 }
  0x76   : > { %615 = vmatpush.msrb.mxu2 %v1715_v13  ;;  %720 = vmatpush.msrb.mxu3 %v719_v49 }
  0x77   : > { %731 = vmatpush.msra.mxu0 %v1536_v56  ;;  %574 = vmatpush.msrb.mxu1 %v1481_v63  ;;  %v1963_v63 = vand.u32 4294901760, %v1536_v56  ;;  %v620_v42 = vand.u32 4294901760, %v619_v53  ;;  %v1966_v56 = vand.u32 4294901760, %v1567_v48 }
  0x78   : > { %435 = vmatmul.f32.vlgmr.msra.gmra.mxu2 %v1700_v15  ;;  %474 = vmatmul.f32.vlgmr.msra.gmra.mxu3 %v277_v41 }
  0x79   : > { %734 = vmatpush.msra.mxu0 %v1554_v38  ;;  %822 = vmatpush.msra.mxu2 %v1962_v50 }
  0x7a   : > { %576 = vmatpush.msrb.mxu1 %v1498_v21  ;;  %889 = vmatpush.msra.mxu3 %v1492_v8  ;;  %v1965_v21 = vand.u32 4294901760, %v1554_v38  ;;  %v1967_v38 = vand.u32 4294901760, %v1582_v62 }
  0x7b   : > { %737 = vmatpush.msra.mxu0 %v1567_v48  ;;  %826 = vmatpush.msra.mxu2 %v1963_v63 }
  0x7c   : > { %578 = vmatpush.msrb.mxu1 %v1964_v55  ;;  %891 = vmatpush.msra.mxu3 %v1505_v31 }
  0x7d   : > { %740 = vmatpush.msra.mxu0 %v1582_v62  ;;  %381 = vmatmul.f32.vlgmr.msra.gmra.mxu1 %v1676_v22 }
  0x7e   : > { %830 = vmatpush.msra.mxu2 %v1965_v21  ;;  %781 = vmatpush.msra.mxu1 %v1492_v8  ;;  %v1968_v8 = vand.u32 4294901760, %v1599_v24 }
  0x7f   : > { %743 = vmatpush.msra.mxu0 %v1599_v24  ;;  %893 = vmatpush.msra.mxu3 %v1528_v54  ;;  %v1970_v24 = vand.u32 4294901760, %v1618_v35 }
  0x80   : > { %834 = vmatpush.msra.mxu2 %v1966_v56  ;;  %783 = vmatpush.msra.mxu1 %v1505_v31  ;;  %v1969_v31 = vand.u32 4294901760, %v1612_v27 }
  0x81   : > { %621 = vmatmul.f32.vlgmr.msrb.gmra.mxu2 %v620_v42  ;;  %746 = vmatpush.msra.mxu0 %v1612_v27  ;;  %v1972_v27 = vand.u32 4294901760, %v1647_v59 }
  0x82   : > { %785 = vmatpush.msra.mxu1 %v1528_v54  ;;  %838 = vmatpush.msra.mxu2 %v1967_v38 }
  0x83   : > { %895 = vmatpush.msra.mxu3 %v1543_v12  ;;  %543 = vmatmul.f32.vlgmr.msrb.gmra.mxu0 %v1676_v22 }
  0x84   : > { %722 = vmatmul.f32.vlgmr.msrb.gmra.mxu3 %v1754_v46  ;;  %749 = vmatpush.msra.mxu0 %v1618_v35 }
  0x85   : > { %787 = vmatpush.msra.mxu1 %v1543_v12  ;;  %842 = vmatpush.msra.mxu2 %v1968_v8 }
  0x86   : > { %897 = vmatpush.msra.mxu3 %v1556_v26  ;;  %580 = vmatmul.f32.vlgmr.msrb.gmra.mxu1 %v1676_v22 }
  0x87   : > { %752 = vmatpush.msra.mxu0 %v1630_v45  ;;  %789 = vmatpush.msra.mxu1 %v1556_v26  ;;  %v1971_v26 = vand.u32 4294901760, %v1630_v45 }
  0x88   : > { %846 = vmatpush.msra.mxu2 %v1969_v31  ;;  %899 = vmatpush.msra.mxu3 %v1569_v51 }
  0x89   : > { %755 = vmatpush.msra.mxu0 %v1647_v59  ;;  %791 = vmatpush.msra.mxu1 %v1569_v51 }
  0x8a   : > { %850 = vmatpush.msra.mxu2 %v1970_v24  ;;  %901 = vmatpush.msra.mxu3 %v1584_v28 }
  0x8b   : > { %758 = vmatpush.msra.mxu0 %v1661_v61  ;;  %793 = vmatpush.msra.mxu1 %v1584_v28  ;;  %v1973_v28 = vand.u32 4294901760, %v1661_v61 }
  0x8c   : > { %854 = vmatpush.msra.mxu2 %v1971_v26  ;;  %903 = vmatpush.msra.mxu3 %v1591_v6 }
  0x8d   : > { %761 = vmatpush.msra.mxu0 %v1674_v60  ;;  %795 = vmatpush.msra.mxu1 %v1591_v6 }
  0x8e   : > { %858 = vmatpush.msra.mxu2 %v1972_v27  ;;  %905 = vmatpush.msra.mxu3 %v1604_v23 }
  0x8f   : > { %764 = vmatpush.msra.mxu0 %v1689_v16  ;;  %797 = vmatpush.msra.mxu1 %v1604_v23  ;;  %v242_v23 = vstv %s207_s21 }
  0x90   : > { %862 = vmatpush.msra.mxu2 %v1973_v28  ;;  %907 = vmatpush.msra.mxu3 %v1625_v30 }
  0x91   : > { %767 = vmatpush.msra.mxu0 %v1713_v43  ;;  %799 = vmatpush.msra.mxu1 %v1625_v30 }
  0x92   : > { %866 = vmatpush.msra.mxu2 %v693_v4  ;;  %909 = vmatpush.msra.mxu3 %v1637_v57 }
  0x93   : > { %770 = vmatpush.msra.mxu0 %v1726_v37  ;;  %801 = vmatpush.msra.mxu1 %v1637_v57 }
  0x94   : > { %870 = vmatpush.msra.mxu2 %v699_v29  ;;  %911 = vmatpush.msra.mxu3 %v1649_v32 }
  0x95   : > { %773 = vmatpush.msra.mxu0 %v1737_v47  ;;  %803 = vmatpush.msra.mxu1 %v1649_v32 }
  0x96   : > { %874 = vmatpush.msra.mxu2 %v705_v5  ;;  %913 = vmatpush.msra.mxu3 %v1663_v0 }
  0x97   : > { %776 = vmatmul.f32.vlgmr.msra.gmra.mxu0 %v1771_v40  ;;  %805 = vmatpush.msra.mxu1 %v1663_v0 }
  0x98   : > { %878 = vmatpush.msra.mxu2 %v711_v18  ;;  %915 = vmatpush.msra.mxu3 %v1686_v36 }
  0x99   : > { %807 = vmatpush.msra.mxu1 %v1686_v36 }
  0x9a   : > { %882 = vmatpush.msra.mxu2 %v717_v20  ;;  %917 = vmatpush.msra.mxu3 %v1702_v2 }
  0x9b   : > { %884 = vmatmul.f32.vlgmr.msra.gmra.mxu2 %v1754_v46  ;;  %809 = vmatpush.msra.mxu1 %v1702_v2 }
  0x9c   : > { %919 = vmatpush.msra.mxu3 %v1715_v13 }
  0x9d   : > { %921 = vmatmul.f32.vlgmr.msra.gmra.mxu3 %v1754_v46  ;;  %811 = vmatpush.msra.mxu1 %v1715_v13 }
  0x9e   : > { %815 = vmatmul.f32.vlgmr.msra.gmra.mxu1 %v618_v52 }
  0xed   : > { %v281_v51 = vpop.f32.mrf.mxu0 }
  0xee   : > { %v282_v30 = vadd.f32 %v281_v51, %v242_v23 }
  0xfa   : > { %v382_v54 = vpop.f32.mrf.mxu1 }
  0xfb   : > { %v383_v62 = vadd.f32 %v382_v54, %v282_v30  ;;  %v436_v12 = vpop.f32.mrf.mxu2  ;;  %v475_v48 = vpop.f32.mrf.mxu3 }
  0xfd   : > { %v437_v6 = vadd.f32 %v436_v12, %v383_v62 }
  0xff   : > { %v476_v35 = vadd.f32 %v475_v48, %v437_v6 }
 0x100   : > { %v544_v57 = vpop.f32.mrf.mxu0 }
 0x101   : > { %v545_v45 = vadd.f32 %v544_v57, %v476_v35 }
 0x103   : > { %v581_v32 = vpop.f32.mrf.mxu1 }
 0x104   : > { %v582_v0 = vadd.f32 %v581_v32, %v545_v45  ;;  %v622_v59 = vpop.f32.mrf.mxu2 }
 0x106   : > { %v623_v22 = vadd.f32 %v622_v59, %v582_v0 }
 0x107   : > { %v723_v61 = vpop.f32.mrf.mxu3 }
 0x108   : > { %v724_v60 = vadd.f32 %v723_v61, %v623_v22 }
 0x114   : > { %v777_v16 = vpop.f32.mrf.mxu0 }
 0x115   : > { %v778_v15 = vadd.f32 %v777_v16, %v724_v60 }
 0x11b   : > { %v816_v36 = vpop.f32.mrf.mxu1 }
 0x11c   : > { %v817_v4 = vadd.f32 %v816_v36, %v778_v15 }
 0x11e   : > { %v885_v2 = vpop.f32.mrf.mxu2 }
 0x11f   : > { %v886_v29 = vadd.f32 %v885_v2, %v817_v4 }
 0x120   : > { %v922_v43 = vpop.f32.mrf.mxu3 }
 0x121   : > { %v923_v13 = vadd.f32 %v922_v43, %v886_v29 }
 0x123   : > { %v925_v41 = vmul.f32 0.5, %v923_v13 }
 0x125   : > { %1103 = vtanh.f32 %v925_v41 }
 0x12b   : > { %v1104_v37 = vpop.eup %1103 }
 0x12c   : > { %v927_v5 = vmul.f32 0.5, %v1104_v37 }
 0x12e   : > { %v928_v47 = vadd.f32 0.5, %v927_v5 }
 0x130   : > { %929 = vst [vmem:[%s206_s19] sm:$0xff] %v928_v47 }
 0x131   : > { %1192 = shalt.err (!%p1189_p9)
}
 0x132   : > { %1050 = dma.vmem_to_hbm [thread:$0]  (%p1323_p13), %s944_s22, 128, %s946_s23, %s931_s24  }
 0x133 PF: > { %s957_s6 = sand.u32 1, %s1223_s14   ;;  %p1974_p10 = scmp.ge.s32.totalorder %s1235_s17, 2 }
 0x134   : > { %s958_s10 = scalar_lea.sflag [#allocation5], %s957_s6 }
 0x135   : > { %p1061_p11 = pnand %p1974_p10, %p1328_p4 }
 0x137   : > { %p1062_p0 = pneg %p1061_p11 }
 0x139   : > { %1218 = dma.done.wait (%p1062_p0), %s958_s10, 128  }
 0x13a   : > { %1220 = vsyncadd (%p1062_p0), %s958_s10, 4294967168  ;;  %p18_p2 = scmp.ge.s32.totalorder %s1303_s27, 4   ;;  %s1975_s14 = smov %s1227_s15 }
 0x13b   : > { %s1976_s15 = smov %s1231_s16  ;;  %s1977_s16 = smov %s1315_s30 }
 0x13c   : > { %s1978_s17 = smov %s1303_s27  ;;  %20 = sbr.rel (!%p18_p2) target bundleno = 8 (0x8), region = 82 }
 0x141   :  { %964 = vsyncpa [#allocation4], 1 }
 0x142   :  { %966 = vsyncpa [#allocation4 + $0x1], 1 }
 0x143   :  { %967 = vsyncpa [#allocation7], 1 }
 0x144   :  { %969 = vsyncpa [#allocation7 + $0x1], 1 }
 0x145   :  { %970 = vsyncpa [#allocation5], 1 }
 0x146   :  { %972 = vsyncpa [#allocation5 + $0x1], 1 }

</bundles_post_ra>
